<compile_context>
chip_gen: v5e
topology: v5e:2x2
jax: 0.10.0
libtpu: 0.0.40
codegen_flags: <defaults>
</compile_context>

<pallas_src>
import functools

import jax
import jax.numpy as jnp
from jax.experimental import pallas as pl
from jax.experimental.pallas import tpu as pltpu

EPS = 1e-5  # torch.nn.BatchNorm2d default eps


# ---------------------------------------------------------------------------
# Kernel
# ---------------------------------------------------------------------------
def _apply_converter(h, w_ref, v_ref, dims, is_gate, inv_p):
    """One PopulationConverter: [Conv1x1 -> ReLU -> BatchNorm2d]* -> Conv1x1 [-> Sigmoid].

    w_ref : (L, C_max, C_max) stacked, zero-padded conv weights.
    v_ref : (L, C_max, 3) stacked per-channel vectors: [:,:,0]=bias, 1=BN gamma, 2=BN beta.
    dims  : tuple of (c_in, c_out) per conv layer (static Python values).
    """
    n_layers = len(dims)
    for l, (c_in, c_out) in enumerate(dims):
        w_slab = w_ref[l]                       # (C_max, C_max) single coalesced load
        v_slab = v_ref[l]                       # (C_max, 3)
        w = w_slab[:c_out, :c_in]
        b = v_slab[:c_out, 0:1]
        h = jnp.dot(w, h, preferred_element_type=jnp.float32) + b   # 1x1 conv (MXU)
        if l < n_layers - 1:
            h = jnp.maximum(h, 0.0)                                  # ReLU (VPU)
            # BatchNorm2d training-mode stats over the lane (pixel) axis, one pass.
            s1 = jnp.sum(h, axis=1, keepdims=True)                   # (C,1)  XLU
            s2 = jnp.sum(h * h, axis=1, keepdims=True)               # (C,1)  VPU+XLU
            mean = s1 * inv_p
            var = jnp.maximum(s2 * inv_p - mean * mean, 0.0)  # clamp f32 cancellation
            gamma = v_slab[:c_out, 1:2]
            beta = v_slab[:c_out, 2:3]
            scale = gamma * jax.lax.rsqrt(var + EPS)                 # (C,1) -- cheap
            shift = beta - mean * scale
            h = h * scale + shift                                    # 2 VPU ops/elem
    if is_gate:
        h = jax.nn.sigmoid(h)                                        # EUP
    return h


def _adjacency_kernel(enc_dims, dec_dims, inv_p,
                      x_ref, enc_w_ref, enc_v_ref, dec_w_ref, dec_v_ref,
                      latent_ref, recon_ref):
    x = x_ref[...]                                                   # (C_in, P)
    latent = _apply_converter(x, enc_w_ref, enc_v_ref, enc_dims, True, inv_p)
    latent_ref[...] = latent
    recon = _apply_converter(latent, dec_w_ref, dec_v_ref, dec_dims, False, inv_p)
    recon_ref[...] = recon


# ---------------------------------------------------------------------------
# Parameter init (deterministic, synthetic — no checkpoint load), pre-stacked
# so each converter contributes exactly two operand DMAs.
# ---------------------------------------------------------------------------
def init_converter_params(key, input_dim, hidden_dim, output_dim, num_layers, adj_channel):
    """Returns (dims, w_stack, v_stack, key).

    dims    : tuple of (c_in, c_out) per conv layer
    w_stack : (L, C_max, C_max) f32, zero-padded conv weights
    v_stack : (L, C_max, 3)    f32: [:,:,0]=conv bias, 1=BN gamma, 2=BN beta
    """
    dims = []
    in_dim = input_dim
    for _ in range(num_layers - 1):
        dims.append((in_dim, hidden_dim))
        in_dim = hidden_dim
    dims.append((in_dim, output_dim * adj_channel))
    dims = tuple(dims)

    c_max = max(max(ci, co) for ci, co in dims)
    n_l = len(dims)
    w_stack = jnp.zeros((n_l, c_max, c_max), jnp.float32)
    v_stack = jnp.zeros((n_l, c_max, 3), jnp.float32)
    for l, (ci, co) in enumerate(dims):
        key, k1, k2 = jax.random.split(key, 3)
        w_stack = w_stack.at[l, :co, :ci].set(
            jax.random.normal(k1, (co, ci), jnp.float32) * 0.1)
        v_stack = v_stack.at[l, :co, 0].set(
            jax.random.normal(k2, (co,), jnp.float32) * 0.1)
        if l < n_l - 1:                     # hidden block -> BatchNorm after it
            v_stack = v_stack.at[l, :co, 1].set(1.0)   # gamma (beta stays 0)
    return dims, w_stack, v_stack, key


# ---------------------------------------------------------------------------
# Wrapper
# ---------------------------------------------------------------------------
def adjacency_with_mp(x, enc_w, enc_v, dec_w, dec_v, *, enc_dims, dec_dims):
    b, s, c, n, _ = x.shape
    p = b * s * n * n
    latent_ch = enc_dims[-1][1]
    recon_ch = dec_dims[-1][1]

    # TODO(synk): this NCHW -> (C, P) relayout (and the inverse ones below) still
    # round-trips HBM in the wrapper; fold it into the kernel via a (b, s)-blocked
    # index_map once the P-tiled grid (see TODO below) exists.
    x2 = jnp.transpose(x, (2, 0, 1, 3, 4)).reshape(c, p).astype(jnp.float32)

    # VMEM budget: x + both outputs + a few live hidden activations + params.
    hid_max = max([co for _, co in enc_dims[:-1]] + [co for _, co in dec_dims[:-1]] + [1])
    est = 4 * p * (c + latent_ch + recon_ch + 3 * hid_max)
    est += 4 * (enc_w.size + enc_v.size + dec_w.size + dec_v.size)
    if est > 48 * 1024 * 1024:
        # TODO(synk): restructure into a P-tiled grid with a two-sweep BatchNorm
        # (conv+ReLU+sum/sumsq accumulation sweep with pl.when init/finalize on an
        # "arbitrary" tile axis, then a normalize + next-conv sweep) so activations
        # stream through VMEM instead of being fully resident.  Required for large
        # b*s*n*n; the ceiling is hit earliest on v7x (64 MiB VMEM).
        raise ValueError(
            f"problem too large for the untiled kernel (~{est} bytes of VMEM needed)")
    vmem_limit = int(min(100 * 1024 * 1024, max(8 * 1024 * 1024, 2 * est)))

    kernel = functools.partial(_adjacency_kernel, enc_dims, dec_dims, 1.0 / p)
    vmem = pl.BlockSpec(memory_space=pltpu.MemorySpace.VMEM)

    latent2, recon2 = pl.pallas_call(
        kernel,
        out_shape=(jax.ShapeDtypeStruct((latent_ch, p), jnp.float32),
                   jax.ShapeDtypeStruct((recon_ch, p), jnp.float32)),
        in_specs=[vmem] * 5,
        out_specs=(vmem, vmem),
        compiler_params=pltpu.CompilerParams(vmem_limit_bytes=vmem_limit),
    )(x2, enc_w, enc_v, dec_w, dec_v)

    # Back to the PyTorch output shapes.
    latent = latent2.reshape(latent_ch, b, s, n, n).transpose(1, 2, 0, 3, 4)  # (b,s,out*adj,n,n)
    recon = recon2.reshape(recon_ch, b, s, n, n).transpose(1, 2, 0, 3, 4)
    recon = recon.reshape(b, -1, n, n)                                        # .view(b, -1, n, n)
    return latent, recon


# ---------------------------------------------------------------------------
# Pure-JAX reference (classic two-pass BN formula) for correctness check.
# ---------------------------------------------------------------------------
def _ref_converter(h, w_stack, v_stack, dims, is_gate):
    n_l = len(dims)
    for l, (ci, co) in enumerate(dims):
        w = w_stack[l, :co, :ci]
        b = v_stack[l, :co, 0:1]
        h = w @ h + b
        if l < n_l - 1:
            g = v_stack[l, :co, 1:2]
            bt = v_stack[l, :co, 2:3]
            h = jnp.maximum(h, 0.0)
            m = jnp.mean(h, axis=1, keepdims=True)
            v = jnp.mean(jnp.square(h - m), axis=1, keepdims=True)
            h = (h - m) / jnp.sqrt(v + EPS) * g + bt
    return jax.nn.sigmoid(h) if is_gate else h


if __name__ == "__main__":
    # Small shapes consistent with the module.
    batch, seq, input_dim, node_cnt = 2, 4, 4, 8
    hidden_dim, output_dim = 16, 4
    adj_channel = 1          # required for the reference module to be shape-consistent
    adj_num_layers = 2

    key = jax.random.PRNGKey(0)
    key, kx = jax.random.split(key)
    x = jax.random.normal(kx, (batch, seq, input_dim, node_cnt, node_cnt), jnp.float32)

    enc_dims, enc_w, enc_v, key = init_converter_params(
        key, input_dim, hidden_dim, output_dim, adj_num_layers, adj_channel)
    dec_dims, dec_w, dec_v, key = init_converter_params(
        key, output_dim * adj_channel, hidden_dim, input_dim, adj_num_layers, 1)

    latent, recon = adjacency_with_mp(
        x, enc_w, enc_v, dec_w, dec_v, enc_dims=enc_dims, dec_dims=dec_dims)
    jax.block_until_ready((latent, recon))

    assert latent.shape == (batch, seq, output_dim * adj_channel, node_cnt, node_cnt)
    assert recon.shape == (batch, seq * input_dim, node_cnt, node_cnt)

    # Reference check (channels-major math, two-pass BN vs the kernel's one-pass).
    p = batch * seq * node_cnt * node_cnt
    x2 = jnp.transpose(x, (2, 0, 1, 3, 4)).reshape(input_dim, p)
    lat_ref2 = _ref_converter(x2, enc_w, enc_v, enc_dims, True)
    rec_ref2 = _ref_converter(lat_ref2, dec_w, dec_v, dec_dims, False)
    lat_ref = lat_ref2.reshape(-1, batch, seq, node_cnt, node_cnt).transpose(1, 2, 0, 3, 4)
    rec_ref = rec_ref2.reshape(-1, batch, seq, node_cnt, node_cnt).transpose(1, 2, 0, 3, 4)
    rec_ref = rec_ref.reshape(batch, -1, node_cnt, node_cnt)
    assert jnp.allclose(latent, lat_ref, rtol=1e-3, atol=1e-3)
    assert jnp.allclose(recon, rec_ref, rtol=1e-3, atol=1e-3)

    print("KERNEL_OK")
</pallas_src>

<mosaic_0001>
module attributes {stable_mosaic.version = 11 : i64} {
  func.func @_adjacency_kernel(%arg0: memref<4x512xf32, #tpu.memory_space<vmem>>, %arg1: memref<2x16x16xf32, #tpu.memory_space<vmem>>, %arg2: memref<2x16x3xf32, #tpu.memory_space<vmem>>, %arg3: memref<2x16x16xf32, #tpu.memory_space<vmem>>, %arg4: memref<2x16x3xf32, #tpu.memory_space<vmem>>, %arg5: memref<4x512xf32, #tpu.memory_space<vmem>>, %arg6: memref<4x512xf32, #tpu.memory_space<vmem>>) attributes {dimension_semantics = [], scalar_prefetch = 0 : i64, scratch_operands = 0 : i64, tpu.core_type = #tpu.core_type<tc>} {
    %c0 = arith.constant 0 : index
    %c0_0 = arith.constant 0 : index
    %0 = vector.load %arg0[%c0, %c0_0] : memref<4x512xf32, #tpu.memory_space<vmem>>, vector<4x512xf32>
    %c0_1 = arith.constant 0 : index
    %c0_2 = arith.constant 0 : index
    %c0_3 = arith.constant 0 : index
    %1 = vector.load %arg1[%c0_1, %c0_2, %c0_3] : memref<2x16x16xf32, #tpu.memory_space<vmem>>, vector<1x16x16xf32>
    %2 = vector.shape_cast %1 : vector<1x16x16xf32> to vector<16x16xf32>
    %c0_4 = arith.constant 0 : index
    %c0_5 = arith.constant 0 : index
    %c0_6 = arith.constant 0 : index
    %3 = vector.load %arg2[%c0_4, %c0_5, %c0_6] : memref<2x16x3xf32, #tpu.memory_space<vmem>>, vector<1x16x3xf32>
    %4 = vector.shape_cast %3 : vector<1x16x3xf32> to vector<16x3xf32>
    %5 = vector.extract_strided_slice %2 {offsets = [0, 0], sizes = [16, 4], strides = [1, 1]} : vector<16x16xf32> to vector<16x4xf32>
    %6 = vector.extract_strided_slice %4 {offsets = [0, 0], sizes = [16, 1], strides = [1, 1]} : vector<16x3xf32> to vector<16x1xf32>
    %cst = arith.constant dense<0.000000e+00> : vector<16x512xf32>
    %7 = tpu.matmul %5, %0, %cst {dimension_numbers = #tpu.dot_dimension_numbers<[1], [0], [0], [1], [0, 0, 1, 1], [], []>} : vector<16x4xf32>, vector<4x512xf32>, vector<16x512xf32> -> vector<16x512xf32>
    %8 = vector.broadcast %6 : vector<16x1xf32> to vector<16x512xf32>
    %9 = arith.addf %7, %8 : vector<16x512xf32>
    %cst_7 = arith.constant 0.000000e+00 : f32
    %10 = vector.broadcast %cst_7 : f32 to vector<16x512xf32>
    %11 = arith.maximumf %9, %10 : vector<16x512xf32>
    %cst_8 = arith.constant dense<0.000000e+00> : vector<16xf32>
    %12 = vector.multi_reduction <add>, %11, %cst_8 [1] : vector<16x512xf32> to vector<16xf32>
    %13 = vector.shape_cast %12 : vector<16xf32> to vector<16x1xf32>
    %14 = arith.mulf %11, %11 : vector<16x512xf32>
    %cst_9 = arith.constant dense<0.000000e+00> : vector<16xf32>
    %15 = vector.multi_reduction <add>, %14, %cst_9 [1] : vector<16x512xf32> to vector<16xf32>
    %16 = vector.shape_cast %15 : vector<16xf32> to vector<16x1xf32>
    %cst_10 = arith.constant 0.001953125 : f32
    %17 = vector.broadcast %cst_10 : f32 to vector<16x1xf32>
    %18 = arith.mulf %13, %17 : vector<16x1xf32>
    %cst_11 = arith.constant 0.001953125 : f32
    %19 = vector.broadcast %cst_11 : f32 to vector<16x1xf32>
    %20 = arith.mulf %16, %19 : vector<16x1xf32>
    %21 = arith.mulf %18, %18 : vector<16x1xf32>
    %22 = arith.subf %20, %21 : vector<16x1xf32>
    %cst_12 = arith.constant 0.000000e+00 : f32
    %23 = vector.broadcast %cst_12 : f32 to vector<16x1xf32>
    %24 = arith.maximumf %22, %23 : vector<16x1xf32>
    %25 = vector.extract_strided_slice %4 {offsets = [0, 1], sizes = [16, 1], strides = [1, 1]} : vector<16x3xf32> to vector<16x1xf32>
    %26 = vector.extract_strided_slice %4 {offsets = [0, 2], sizes = [16, 1], strides = [1, 1]} : vector<16x3xf32> to vector<16x1xf32>
    %cst_13 = arith.constant 9.99999974E-6 : f32
    %27 = vector.broadcast %cst_13 : f32 to vector<16x1xf32>
    %28 = arith.addf %24, %27 : vector<16x1xf32>
    %29 = math.rsqrt %28 : vector<16x1xf32>
    %30 = arith.mulf %25, %29 : vector<16x1xf32>
    %31 = arith.mulf %18, %30 : vector<16x1xf32>
    %32 = arith.subf %26, %31 : vector<16x1xf32>
    %33 = vector.broadcast %30 : vector<16x1xf32> to vector<16x512xf32>
    %34 = arith.mulf %11, %33 : vector<16x512xf32>
    %35 = vector.broadcast %32 : vector<16x1xf32> to vector<16x512xf32>
    %36 = arith.addf %34, %35 : vector<16x512xf32>
    %c1 = arith.constant 1 : index
    %c0_14 = arith.constant 0 : index
    %c0_15 = arith.constant 0 : index
    %37 = vector.load %arg1[%c1, %c0_14, %c0_15] : memref<2x16x16xf32, #tpu.memory_space<vmem>>, vector<1x16x16xf32>
    %38 = vector.shape_cast %37 : vector<1x16x16xf32> to vector<16x16xf32>
    %c1_16 = arith.constant 1 : index
    %c0_17 = arith.constant 0 : index
    %c0_18 = arith.constant 0 : index
    %39 = vector.load %arg2[%c1_16, %c0_17, %c0_18] : memref<2x16x3xf32, #tpu.memory_space<vmem>>, vector<1x16x3xf32>
    %40 = vector.shape_cast %39 : vector<1x16x3xf32> to vector<16x3xf32>
    %41 = vector.extract_strided_slice %38 {offsets = [0, 0], sizes = [4, 16], strides = [1, 1]} : vector<16x16xf32> to vector<4x16xf32>
    %42 = vector.extract_strided_slice %40 {offsets = [0, 0], sizes = [4, 1], strides = [1, 1]} : vector<16x3xf32> to vector<4x1xf32>
    %cst_19 = arith.constant dense<0.000000e+00> : vector<4x512xf32>
    %43 = tpu.matmul %41, %36, %cst_19 {dimension_numbers = #tpu.dot_dimension_numbers<[1], [0], [0], [1], [0, 0, 1, 1], [], []>} : vector<4x16xf32>, vector<16x512xf32>, vector<4x512xf32> -> vector<4x512xf32>
    %44 = vector.broadcast %42 : vector<4x1xf32> to vector<4x512xf32>
    %45 = arith.addf %43, %44 : vector<4x512xf32>
    %46 = arith.negf %45 : vector<4x512xf32>
    %47 = math.exp %46 : vector<4x512xf32>
    %cst_20 = arith.constant 1.000000e+00 : f32
    %48 = vector.broadcast %cst_20 : f32 to vector<4x512xf32>
    %49 = arith.addf %48, %47 : vector<4x512xf32>
    %50 = arith.divf %48, %49 : vector<4x512xf32>
    %c0_21 = arith.constant 0 : index
    %c0_22 = arith.constant 0 : index
    %51 = vector.load %arg5[%c0_21, %c0_22] : memref<4x512xf32, #tpu.memory_space<vmem>>, vector<4x512xf32>
    tpu.vector_store %arg5[%c0_21, %c0_22], %50 {strides = array<i32>} : memref<4x512xf32, #tpu.memory_space<vmem>>, vector<4x512xf32>,
    %c0_23 = arith.constant 0 : index
    %c0_24 = arith.constant 0 : index
    %c0_25 = arith.constant 0 : index
    %52 = vector.load %arg3[%c0_23, %c0_24, %c0_25] : memref<2x16x16xf32, #tpu.memory_space<vmem>>, vector<1x16x16xf32>
    %53 = vector.shape_cast %52 : vector<1x16x16xf32> to vector<16x16xf32>
    %c0_26 = arith.constant 0 : index
    %c0_27 = arith.constant 0 : index
    %c0_28 = arith.constant 0 : index
    %54 = vector.load %arg4[%c0_26, %c0_27, %c0_28] : memref<2x16x3xf32, #tpu.memory_space<vmem>>, vector<1x16x3xf32>
    %55 = vector.shape_cast %54 : vector<1x16x3xf32> to vector<16x3xf32>
    %56 = vector.extract_strided_slice %53 {offsets = [0, 0], sizes = [16, 4], strides = [1, 1]} : vector<16x16xf32> to vector<16x4xf32>
    %57 = vector.extract_strided_slice %55 {offsets = [0, 0], sizes = [16, 1], strides = [1, 1]} : vector<16x3xf32> to vector<16x1xf32>
    %cst_29 = arith.constant dense<0.000000e+00> : vector<16x512xf32>
    %58 = tpu.matmul %56, %50, %cst_29 {dimension_numbers = #tpu.dot_dimension_numbers<[1], [0], [0], [1], [0, 0, 1, 1], [], []>} : vector<16x4xf32>, vector<4x512xf32>, vector<16x512xf32> -> vector<16x512xf32>
    %59 = vector.broadcast %57 : vector<16x1xf32> to vector<16x512xf32>
    %60 = arith.addf %58, %59 : vector<16x512xf32>
    %cst_30 = arith.constant 0.000000e+00 : f32
    %61 = vector.broadcast %cst_30 : f32 to vector<16x512xf32>
    %62 = arith.maximumf %60, %61 : vector<16x512xf32>
    %cst_31 = arith.constant dense<0.000000e+00> : vector<16xf32>
    %63 = vector.multi_reduction <add>, %62, %cst_31 [1] : vector<16x512xf32> to vector<16xf32>
    %64 = vector.shape_cast %63 : vector<16xf32> to vector<16x1xf32>
    %65 = arith.mulf %62, %62 : vector<16x512xf32>
    %cst_32 = arith.constant dense<0.000000e+00> : vector<16xf32>
    %66 = vector.multi_reduction <add>, %65, %cst_32 [1] : vector<16x512xf32> to vector<16xf32>
    %67 = vector.shape_cast %66 : vector<16xf32> to vector<16x1xf32>
    %cst_33 = arith.constant 0.001953125 : f32
    %68 = vector.broadcast %cst_33 : f32 to vector<16x1xf32>
    %69 = arith.mulf %64, %68 : vector<16x1xf32>
    %cst_34 = arith.constant 0.001953125 : f32
    %70 = vector.broadcast %cst_34 : f32 to vector<16x1xf32>
    %71 = arith.mulf %67, %70 : vector<16x1xf32>
    %72 = arith.mulf %69, %69 : vector<16x1xf32>
    %73 = arith.subf %71, %72 : vector<16x1xf32>
    %cst_35 = arith.constant 0.000000e+00 : f32
    %74 = vector.broadcast %cst_35 : f32 to vector<16x1xf32>
    %75 = arith.maximumf %73, %74 : vector<16x1xf32>
    %76 = vector.extract_strided_slice %55 {offsets = [0, 1], sizes = [16, 1], strides = [1, 1]} : vector<16x3xf32> to vector<16x1xf32>
    %77 = vector.extract_strided_slice %55 {offsets = [0, 2], sizes = [16, 1], strides = [1, 1]} : vector<16x3xf32> to vector<16x1xf32>
    %cst_36 = arith.constant 9.99999974E-6 : f32
    %78 = vector.broadcast %cst_36 : f32 to vector<16x1xf32>
    %79 = arith.addf %75, %78 : vector<16x1xf32>
    %80 = math.rsqrt %79 : vector<16x1xf32>
    %81 = arith.mulf %76, %80 : vector<16x1xf32>
    %82 = arith.mulf %69, %81 : vector<16x1xf32>
    %83 = arith.subf %77, %82 : vector<16x1xf32>
    %84 = vector.broadcast %81 : vector<16x1xf32> to vector<16x512xf32>
    %85 = arith.mulf %62, %84 : vector<16x512xf32>
    %86 = vector.broadcast %83 : vector<16x1xf32> to vector<16x512xf32>
    %87 = arith.addf %85, %86 : vector<16x512xf32>
    %c1_37 = arith.constant 1 : index
    %c0_38 = arith.constant 0 : index
    %c0_39 = arith.constant 0 : index
    %88 = vector.load %arg3[%c1_37, %c0_38, %c0_39] : memref<2x16x16xf32, #tpu.memory_space<vmem>>, vector<1x16x16xf32>
    %89 = vector.shape_cast %88 : vector<1x16x16xf32> to vector<16x16xf32>
    %c1_40 = arith.constant 1 : index
    %c0_41 = arith.constant 0 : index
    %c0_42 = arith.constant 0 : index
    %90 = vector.load %arg4[%c1_40, %c0_41, %c0_42] : memref<2x16x3xf32, #tpu.memory_space<vmem>>, vector<1x16x3xf32>
    %91 = vector.shape_cast %90 : vector<1x16x3xf32> to vector<16x3xf32>
    %92 = vector.extract_strided_slice %89 {offsets = [0, 0], sizes = [4, 16], strides = [1, 1]} : vector<16x16xf32> to vector<4x16xf32>
    %93 = vector.extract_strided_slice %91 {offsets = [0, 0], sizes = [4, 1], strides = [1, 1]} : vector<16x3xf32> to vector<4x1xf32>
    %cst_43 = arith.constant dense<0.000000e+00> : vector<4x512xf32>
    %94 = tpu.matmul %92, %87, %cst_43 {dimension_numbers = #tpu.dot_dimension_numbers<[1], [0], [0], [1], [0, 0, 1, 1], [], []>} : vector<4x16xf32>, vector<16x512xf32>, vector<4x512xf32> -> vector<4x512xf32>
    %95 = vector.broadcast %93 : vector<4x1xf32> to vector<4x512xf32>
    %96 = arith.addf %94, %95 : vector<4x512xf32>
    %c0_44 = arith.constant 0 : index
    %c0_45 = arith.constant 0 : index
    %97 = vector.load %arg6[%c0_44, %c0_45] : memref<4x512xf32, #tpu.memory_space<vmem>>, vector<4x512xf32>
    tpu.vector_store %arg6[%c0_44, %c0_45], %96 {strides = array<i32>} : memref<4x512xf32, #tpu.memory_space<vmem>>, vector<4x512xf32>,
    return
  }
}

</mosaic_0001>

<bundles_post_ra>
// kernel: tpu_custom_call.1
= control target key start
LH: loop header
LB: loop body
LE: loop exit
PB: predicated region body
PF: predicated region fallthrough
CT: control target
= control target key end

     0   :  { %12 = vsyncpa [#allocation3], 0  ;;  %s1278_s0 = inlined_call_operand.hbm [shape: f32[4,512], index: 0, kind: input, shape index: {}]   ;;  %s1279_s1 = inlined_call_operand.vmem [shape: f32[2,16,16], index: 1, kind: input, shape index: {}]   ;;  %s1280_s2 = inlined_call_operand.vmem [shape: f32[2,16,3], index: 2, kind: input, shape index: {}]   ;;  %s1281_s3 = inlined_call_operand.vmem [shape: f32[2,16,16], index: 3, kind: input, shape index: {}]   ;;  %s1282_s4 = inlined_call_operand.vmem [shape: f32[2,16,3], index: 4, kind: input, shape index: {}]   ;;  %s1283_s5 = inlined_call_operand.hbm [shape: f32[4,512], index: 5, kind: output, shape index: {0}]   ;;  %s1284_s6 = inlined_call_operand.hbm [shape: f32[4,512], index: 6, kind: output, shape index: {1}]  }
   0x1   :  { %13 = vsyncpa [#allocation4], 0 }
   0x2   :  { %14 = vsyncpa [#allocation7], 0  ;;  %s20_s23 = sshll.u32 %s1278_s0, 4  ;;  %s1007_s24 = smov [#allocation2]   ;;  %s21_s23 = int_to_ptr.hbm [resolvable:$true] %s20_s23 }
   0x3   :  { %s22_s25 = sshll.u32 %s1007_s24, 4  ;;  %s23_s25 = int_to_ptr.vmem [resolvable:$true] %s22_s25 }
   0x4   :  { %25 = dma.hbm_to_vmem [thread:$0]  %s21_s23, 256, %s23_s25, [#allocation3]  }
   0x5   :  { %1001 = dma.done.wait [#allocation3], 256  }
   0x6   :  { %1002 = vsyncadd [#allocation3], 4294967040  ;;  %v1008_v0 = vmov 0   ;;  %v39_v1 = vld [vmem:[#allocation2 + $0x8] sm:$0xff]  ;;  %v38_v2 = vld [vmem:[#allocation2] sm:$0xff]  ;;  %vm70_vm0 = vcmask 1043456  }
   0x7   :  { %892 = vset.pattern.permute.xlu0 %v1008_v0  ;;  %897 = vset.pattern.permute.xlu1 %v1008_v0  ;;  %58 = vst [vmem:[#allocation1 + $0x10] ss:$2 sm:$0xff] %v39_v1  ;;  %v1057_v3 = vld [vmem:[%s1280_s2 + $0x8] sm:$0xff]  ;;  %v40_v4 = vld [vmem:[%s1279_s1] sm:$0xff]  ;;  %vm63_vm1 = vcmask 31744   ;;  %v1009_v57 = vmov 1  }
   0x8   :  { %56 = vst [vmem:[#allocation1] ss:$2 sm:$0xff] %v38_v2  ;;  %51 = vperm.xlu0 %892, %v1057_v3   ;;  %v1070_v9 = vld [vmem:[%s1280_s2] sm:$0xff]  ;;  %v41_v10 = vld [vmem:[%s1279_s1 + $0x8] sm:$0xff]  ;;  %893 = vset.pattern.permute.xlu2 %v1009_v57  ;;  %s1010_s9 = smov 1   ;;  %vm298_vm8 = vcmask 130048  }
   0x9   :  { %s819_s25 = sshll.u32 %s1283_s5, 4  ;;  %s1012_s26 = smov [#allocation5]   ;;  %s820_s25 = int_to_ptr.hbm [resolvable:$true] %s819_s25 }
   0xa   :  { %s817_s27 = sshll.u32 %s1012_s26, 4  ;;  %s830_s29 = sshll.u32 %s1284_s6, 4  ;;  %s818_s27 = int_to_ptr.vmem [resolvable:$true] %s817_s27  ;;  %s831_s29 = int_to_ptr.hbm [resolvable:$true] %s830_s29 }
   0xe   :  { %v61_v5 = vld.sshfl [vmem:[#allocation1 + $0x10] sm:$0xff pattern:$0x75316420]  ;;  %v62_v6 = vld.sshfl [vmem:[#allocation1 + $0x18] sm:$0xff pattern:$0x75316420] }
   0xf   :  { %851 = vmatpush.msk.msra.mxu2 %vm70_vm0, %v61_v5  ;;  %854 = vmatpush.msk.msra.mxu3 %vm70_vm0, %v62_v6  ;;  %v59_v7 = vld.sshfl [vmem:[#allocation1] sm:$0xff pattern:$0x75316420]  ;;  %v60_v8 = vld.sshfl [vmem:[#allocation1 + $0x8] sm:$0xff pattern:$0x75316420] }
  0x10   :  { %852 = vmatmul.msk.f32.vlgmr.msra.gmra.mxu2 %vm63_vm1, %v40_v4  ;;  %855 = vmatmul.msk.f32.vlgmr.msra.gmra.mxu3 %vm63_vm1, %v40_v4 }
  0x11   :  { %845 = vmatpush.msk.msra.mxu0 %vm70_vm0, %v59_v7  ;;  %848 = vmatpush.msk.msra.mxu1 %vm70_vm0, %v60_v8 }
  0x12   :  { %846 = vmatmul.msk.f32.vlgmr.msra.gmra.mxu0 %vm63_vm1, %v40_v4  ;;  %849 = vmatmul.msk.f32.vlgmr.msra.gmra.mxu1 %vm63_vm1, %v40_v4 }
  0x13   :  { %46 = vperm.xlu0 %892, %v1070_v9  }
  0x18   :  { %853 = vmatmul.msk.f32.gmra.mxu2 %vm63_vm1, %v41_v10  ;;  %856 = vmatmul.msk.f32.gmra.mxu3 %vm63_vm1, %v41_v10 }
  0x1a   :  { %847 = vmatmul.msk.f32.gmra.mxu0 %vm63_vm1, %v41_v10  ;;  %850 = vmatmul.msk.f32.gmra.mxu1 %vm63_vm1, %v41_v10 }
  0x1b   :  { %894 = vset.pattern.permute.xlu0 %v1009_v57 }
  0x7a   :  { %v52_v11 = vpop.permute.xlu0 %51 }
  0x85   :  { %v47_v16 = vpop.permute.xlu0 %46 }
  0x8f   :  { %v96_v12 = vpop.f32.mrf.mxu0  ;;  %v119_v13 = vpop.f32.mrf.mxu1 }
  0x90   :  { %v97_v17 = vadd.f32 %v96_v12, %v47_v16  ;;  %v120_v18 = vadd.f32 %v119_v13, %v47_v16 }
  0x92   :  { %v1088_v25 = vmax.f32 %v97_v17, 0.0  ;;  %v1090_v26 = vmax.f32 %v120_v18, 0.0 }
  0x93   :  { %v142_v14 = vpop.f32.mrf.mxu2  ;;  %v165_v15 = vpop.f32.mrf.mxu3 }
  0x94   :  { %v143_v27 = vadd.f32 %v142_v14, %v47_v16  ;;  %v189_v38 = vmul.f32 %v1088_v25, %v1088_v25  ;;  %v190_v39 = vmul.f32 %v1090_v26, %v1090_v26  ;;  %v166_v41 = vadd.f32 %v165_v15, %v47_v16 }
  0x95   :  { %v179_v47 = vadd.f32 %v1090_v26, %v1088_v25 }
  0x96   :  { %v1106_v40 = vmax.f32 %v143_v27, 0.0  ;;  %v1116_v48 = vmax.f32 %v166_v41, 0.0  ;;  %v197_v51 = vadd.f32 %v190_v39, %v189_v38 }
  0x97   :  { %v99_v19 = vpop.f32.mrf.mxu0  ;;  %v122_v20 = vpop.f32.mrf.mxu1 }
  0x98   :  { %v100_v21 = vadd.f32 %v99_v19, %v52_v11  ;;  %v123_v22 = vadd.f32 %v122_v20, %v52_v11  ;;  %v191_v50 = vmul.f32 %v1106_v40, %v1106_v40  ;;  %v180_v52 = vadd.f32 %v179_v47, %v1106_v40 }
  0x99   :  { %v192_v53 = vmul.f32 %v1116_v48, %v1116_v48 }
  0x9a   :  { %v1084_v23 = vmax.f32 %v100_v21, 0.0  ;;  %v1086_v24 = vmax.f32 %v123_v22, 0.0  ;;  %v198_v54 = vadd.f32 %v197_v51, %v191_v50  ;;  %v181_v55 = vadd.f32 %v180_v52, %v1116_v48 }
  0x9b   :  { %v145_v28 = vpop.f32.mrf.mxu2  ;;  %v168_v29 = vpop.f32.mrf.mxu3 }
  0x9c   :  { %v193_v30 = vmul.f32 %v1084_v23, %v1084_v23  ;;  %v194_v31 = vmul.f32 %v1086_v24, %v1086_v24  ;;  %v146_v32 = vadd.f32 %v145_v28, %v52_v11  ;;  %v169_v33 = vadd.f32 %v168_v29, %v52_v11 }
  0x9d   :  { %v184_v34 = vadd.f32 %v1086_v24, %v1084_v23  ;;  %v199_v56 = vadd.f32 %v198_v54, %v192_v53 }
  0x9e   :  { %v1098_v35 = vmax.f32 %v146_v32, 0.0  ;;  %v1100_v36 = vmax.f32 %v169_v33, 0.0  ;;  %v202_v37 = vadd.f32 %v194_v31, %v193_v30 }
  0xa0   :  { %v185_v42 = vadd.f32 %v184_v34, %v1098_v35  ;;  %v195_v43 = vmul.f32 %v1098_v35, %v1098_v35  ;;  %v196_v45 = vmul.f32 %v1100_v36, %v1100_v36 }
  0xa2   :  { %v186_v44 = vadd.f32 %v185_v42, %v1100_v36  ;;  %v203_v46 = vadd.f32 %v202_v37, %v195_v43  ;;  %v1011_v37 = vmov 2   ;;  %v858_v43 = vld [vmem:[%s1280_s2 + $0x10] sm:$0xff] }
  0xa4   :  { %187 = vadd.xlane.f32.xlu1 %v186_v44  ;;  %v204_v49 = vadd.f32 %v203_v46, %v196_v45  ;;  %v1142_v44 = vld [vmem:[%s1282_s4] sm:$0xff] }
  0xa6   :  { %205 = vadd.xlane.f32.xlu2 %v204_v49 }
  0xac   :  { %182 = vadd.xlane.f32.xlu1 %v181_v55 }
  0xae   :  { %200 = vadd.xlane.f32.xlu2 %v199_v56 }
 0x117   :  { %v188_v58 = vpop.xlane.xlu1 %187 }
 0x118   :  { %v208_v59 = vmul.f32 0.001953125, %v188_v58 }
 0x119   :  { %v206_v60 = vpop.xlane.xlu2 %205 }
 0x11a   :  { %v212_v61 = vmul.f32 %v208_v59, %v208_v59  ;;  %v210_v62 = vmul.f32 0.001953125, %v206_v60 }
 0x11c   :  { %v214_v63 = vsub.f32 %v210_v62, %v212_v61 }
 0x11e   :  { %v216_v1 = vmax.f32 %v214_v63, 0.0 }
 0x11f   :  { %v183_v2 = vpop.xlane.xlu1 %182 }
 0x120   :  { %v218_v4 = vadd.f32 1e-05, %v216_v1  ;;  %v207_v5 = vmul.f32 0.001953125, %v183_v2 }
 0x121   :  { %v201_v6 = vpop.xlane.xlu2 %200 }
 0x122   :  { %905 = vrsqrt.f32 %v218_v4  ;;  %v211_v7 = vmul.f32 %v207_v5, %v207_v5  ;;  %v209_v8 = vmul.f32 0.001953125, %v201_v6  ;;  %vm235_vm3 = vweird.f32 %v218_v4 }
 0x124   :  { %v213_v10 = vsub.f32 %v209_v8, %v211_v7 }
 0x126   :  { %v215_v11 = vmax.f32 %v213_v10, 0.0 }
 0x128   :  { %v906_v12 = vpop.eup %905  ;;  %v217_v13 = vadd.f32 1e-05, %v215_v11 }
 0x129   :  { %v230_v14 = vmul.f32 %v906_v12, %v218_v4  ;;  %vm236_vm2 = vweird.f32 %v906_v12 }
 0x12a   :  { %907 = vrsqrt.f32 %v217_v13  ;;  %vm237_vm4 = vmor %vm235_vm3, %vm236_vm2  ;;  %vm225_vm6 = vweird.f32 %v217_v13 }
 0x12b   :  { %v231_v15 = vmul.f32 %v906_v12, %v230_v14  ;;  %v1164_v14 = vld [vmem:[%s1282_s4 + $0x8] sm:$0xff] }
 0x12d   :  { %v232_v16 = vmul.f32 0.5, %v231_v15 }
 0x12f   :  { %v233_v17 = vsub.f32 1.5, %v232_v16 }
 0x130   :  { %v908_v18 = vpop.eup %907 }
 0x131   :  { %v220_v19 = vmul.f32 %v908_v18, %v217_v13  ;;  %v234_v20 = vmul.f32 %v906_v12, %v233_v17  ;;  %vm226_vm5 = vweird.f32 %v908_v18 }
 0x132   :  { %vm227_vm7 = vmor %vm225_vm6, %vm226_vm5 }
 0x133   :  { %v221_v21 = vmul.f32 %v908_v18, %v220_v19  ;;  %v238_v22 = vsel %vm237_vm4, %v906_v12, %v234_v20 }
 0x134   :  { %v240_v27 = vmul.f32 %v238_v22, %v1057_v3 }
 0x135   :  { %v222_v28 = vmul.f32 0.5, %v221_v21 }
 0x136   :  { %260 = vperm.xlu2 %893, %v240_v27   ;;  %v242_v29 = vmul.f32 %v240_v27, %v208_v59 }
 0x137   :  { %v223_v30 = vsub.f32 1.5, %v222_v28 }
 0x138   :  { %247 = vrot.lane.b32.xlu0 %v242_v29, %s1010_s9 }
 0x139   :  { %v224_v31 = vmul.f32 %v908_v18, %v223_v30 }
 0x13b   :  { %v228_v32 = vsel %vm227_vm7, %v908_v18, %v224_v31 }
 0x13c   :  { %v239_v33 = vmul.f32 %v228_v32, %v1070_v9 }
 0x13e   :  { %v241_v34 = vmul.f32 %v239_v33, %v207_v5  ;;  %896 = vset.pattern.permute.xlu2 %v1011_v37 }
 0x140   :  { %255 = vperm.xlu0 %894, %v239_v33   ;;  %245 = vrot.lane.b32.xlu1 %v241_v34, %s1010_s9 }
 0x148   :  { %895 = vset.pattern.permute.xlu0 %v1011_v37  ;;  %295 = vperm.xlu1 %897, %v858_v43  }
 0x150   :  { %476 = vperm.xlu1 %897, %v1142_v44  }
 0x158   :  { %901 = vset.pattern.permute.xlu1 %v1011_v37 }
 0x1aa   :  { %v248_v38 = vpop.permute.xlu0 %247 }
 0x1ab   :  { %v252_v39 = vsub.f32 %v1057_v3, %v248_v38  ;;  %v261_v3 = vpop.permute.xlu2 %260 }
 0x1ac   :  { %v268_v46 = vmul.f32 %v261_v3, %v1086_v24  ;;  %v269_v47 = vmul.f32 %v261_v3, %v1098_v35  ;;  %v270_v49 = vmul.f32 %v261_v3, %v1100_v36 }
 0x1ad   :  { %278 = vperm.xlu0 %895, %v252_v39  }
 0x1b2   :  { %v246_v41 = vpop.permute.xlu1 %245  ;;  %v256_v45 = vpop.permute.xlu0 %255 }
 0x1b3   :  { %v251_v42 = vsub.f32 %v1070_v9, %v246_v41  ;;  %v267_v9 = vmul.f32 %v261_v3, %v1084_v23  ;;  %v263_v52 = vmul.f32 %v256_v45, %v1088_v25  ;;  %v264_v53 = vmul.f32 %v256_v45, %v1090_v26  ;;  %v857_v25 = vld [vmem:[%s1279_s1 + $0x10] sm:$0xff] }
 0x1b4   :  { %v265_v59 = vmul.f32 %v256_v45, %v1106_v40  ;;  %v266_v23 = vmul.f32 %v256_v45, %v1116_v48 }
 0x1b5   :  { %273 = vperm.xlu2 %896, %v251_v42   ;;  %900 = vset.pattern.permute.xlu0 %v1009_v57 }
 0x1ba   :  { %v296_v26 = vpop.permute.xlu1 %295 }
 0x1bd   :  { %898 = vset.pattern.permute.xlu2 %v1008_v0 }
 0x1be   :  { %481 = vperm.xlu2 %898, %v1164_v14  }
 0x1c6   :  { %899 = vset.pattern.permute.xlu2 %v1009_v57  ;;  %v470_v57 = vld [vmem:[%s1281_s3] sm:$0xff] }
 0x20f   :  { %v274_v50 = vpop.permute.xlu2 %273 }
 0x210   :  { %v281_v24 = vadd.f32 %v274_v50, %v263_v52  ;;  %v282_v35 = vadd.f32 %v274_v50, %v264_v53  ;;  %v283_v36 = vadd.f32 %v274_v50, %v265_v59  ;;  %v284_v60 = vadd.f32 %v274_v50, %v266_v23 }
 0x21f   :  { %v279_v51 = vpop.permute.xlu0 %278 }
 0x220   :  { %v285_v54 = vadd.f32 %v279_v51, %v267_v9  ;;  %v286_v55 = vadd.f32 %v279_v51, %v268_v46  ;;  %v287_v56 = vadd.f32 %v279_v51, %v269_v47  ;;  %v288_v58 = vadd.f32 %v279_v51, %v270_v49 }
 0x222   :  { %316 = vmatpush.msrb.mxu0 %v285_v54  ;;  %336 = vmatpush.msrb.mxu1 %v286_v55 }
 0x223   :  { %356 = vmatpush.msrb.mxu2 %v287_v56  ;;  %376 = vmatpush.msrb.mxu3 %v288_v58 }
 0x224   :  { %317 = vmatpush.msrb.mxu0 %v281_v24  ;;  %337 = vmatpush.msrb.mxu1 %v282_v35 }
 0x225   :  { %357 = vmatpush.msrb.mxu2 %v283_v36  ;;  %377 = vmatpush.msrb.mxu3 %v284_v60 }
 0x226   :  { %859 = vmatmul.msk.f32.vlgmr.msrb.gmra.mxu0 %vm298_vm8, %v857_v25  ;;  %860 = vmatmul.msk.f32.vlgmr.msrb.gmra.mxu1 %vm298_vm8, %v857_v25 }
 0x227   :  { %861 = vmatmul.msk.f32.vlgmr.msrb.gmra.mxu2 %vm298_vm8, %v857_v25  ;;  %862 = vmatmul.msk.f32.vlgmr.msrb.gmra.mxu3 %vm298_vm8, %v857_v25 }
 0x2a3   :  { %v319_v40 = vpop.f32.mrf.mxu0  ;;  %v339_v48 = vpop.f32.mrf.mxu1 }
 0x2a4   :  { %v320_v61 = vadd.f32 %v319_v40, %v296_v26  ;;  %v340_v62 = vadd.f32 %v339_v48, %v296_v26 }
 0x2a6   :  { %v863_v63 = vmul.f32 -1.442695, %v320_v61  ;;  %v864_v1 = vmul.f32 -1.442695, %v340_v62 }
 0x2a8   :  { %909 = vpow2.f32 %v863_v63  ;;  %v471_v63 = vld [vmem:[%s1281_s3 + $0x8] sm:$0xff] }
 0x2a9   :  { %911 = vpow2.f32 %v864_v1 }
 0x2aa   :  { %v359_v2 = vpop.f32.mrf.mxu2  ;;  %v379_v4 = vpop.f32.mrf.mxu3 }
 0x2ab   :  { %v360_v5 = vadd.f32 %v359_v2, %v296_v26  ;;  %v380_v6 = vadd.f32 %v379_v4, %v296_v26 }
 0x2ad   :  { %v865_v7 = vmul.f32 -1.442695, %v360_v5  ;;  %v866_v8 = vmul.f32 -1.442695, %v380_v6  ;;  %v477_v5 = vpop.permute.xlu1 %476 }
 0x2ae   :  { %v910_v10 = vpop.eup %909 }
 0x2af   :  { %v912_v11 = vpop.eup %911  ;;  %v394_v12 = vadd.f32 1.0, %v910_v10  ;;  %913 = vpow2.f32 %v865_v7 }
 0x2b0   :  { %v395_v13 = vadd.f32 1.0, %v912_v11  ;;  %915 = vpow2.f32 %v866_v8  ;;  %v482_v8 = vpop.permute.xlu2 %481 }
 0x2b1   :  { %917 = vrcp.f32 %v394_v12  ;;  %vm403_vm9 = vweird.f32 %v394_v12  ;;  %v409_v29 = vand.u32 2147483648, %v394_v12  ;;  %v407_v31 = vand.u32 2147483647, %v394_v12 }
 0x2b2   :  { %919 = vrcp.f32 %v395_v13  ;;  %v424_v32 = vand.u32 2147483648, %v395_v13  ;;  %vm418_vm11 = vweird.f32 %v395_v13  ;;  %v422_v34 = vand.u32 2147483647, %v395_v13 }
 0x2b3   :  { %v410_v43 = vor.u32 1.1754944e-38, %v409_v29  ;;  %vm408_vm14 = vcmp.eq.f32.partialorder %v407_v31, 8.507059e+37 }
 0x2b4   :  { %v425_v46 = vor.u32 1.1754944e-38, %v424_v32  ;;  %vm423_vm2 = vcmp.eq.f32.partialorder %v422_v34, 8.507059e+37 }
 0x2b5   :  { %v914_v15 = vpop.eup %913 }
 0x2b6   :  { %v916_v16 = vpop.eup %915  ;;  %v1167_v17 = vadd.f32 1.0, %v914_v15 }
 0x2b7   :  { %v918_v18 = vpop.eup %917  ;;  %v1169_v19 = vadd.f32 1.0, %v916_v16 }
 0x2b8   :  { %v920_v20 = vpop.eup %919  ;;  %v399_v21 = vmul.f32 %v918_v18, %v394_v12  ;;  %921 = vrcp.f32 %v1167_v17  ;;  %vm404_vm10 = vweird.f32 %v918_v18  ;;  %v437_v53 = vand.u32 2147483647, %v1167_v17 }
 0x2b9   :  { %v414_v22 = vmul.f32 %v920_v20, %v395_v13  ;;  %923 = vrcp.f32 %v1169_v19  ;;  %vm419_vm12 = vweird.f32 %v920_v20  ;;  %vm405_vm13 = vmor %vm403_vm9, %vm404_vm10  ;;  %v439_v54 = vand.u32 2147483648, %v1167_v17 }
 0x2ba   :  { %v400_v27 = vsub.f32 1.0, %v399_v21  ;;  %vm420_vm15 = vmor %vm418_vm11, %vm419_vm12  ;;  %v454_v58 = vand.u32 2147483648, %v1169_v19  ;;  %v452_v23 = vand.u32 2147483647, %v1169_v19  ;;  %vm433_vm5 = vweird.f32 %v1167_v17 }
 0x2bb   :  { %v415_v28 = vsub.f32 1.0, %v414_v22  ;;  %v440_v36 = vor.u32 1.1754944e-38, %v439_v54  ;;  %vm448_vm7 = vweird.f32 %v1169_v19  ;;  %vm438_vm9 = vcmp.eq.f32.partialorder %v437_v53, 8.507059e+37 }
 0x2bc   :  { %v401_v30 = vmul.f32 %v918_v18, %v400_v27  ;;  %v455_v26 = vor.u32 1.1754944e-38, %v454_v58  ;;  %vm453_vm11 = vcmp.eq.f32.partialorder %v452_v23, 8.507059e+37 }
 0x2bd   :  { %v416_v33 = vmul.f32 %v920_v20, %v415_v28 }
 0x2be   :  { %v922_v38 = vpop.eup %921  ;;  %v402_v39 = vadd.f32 %v918_v18, %v401_v30 }
 0x2bf   :  { %v924_v41 = vpop.eup %923  ;;  %v429_v42 = vmul.f32 %v922_v38, %v1167_v17  ;;  %v417_v3 = vadd.f32 %v920_v20, %v416_v33  ;;  %vm434_vm3 = vweird.f32 %v922_v38 }
 0x2c0   :  { %v444_v45 = vmul.f32 %v924_v41, %v1169_v19  ;;  %v406_v9 = vsel %vm405_vm13, %v918_v18, %v402_v39  ;;  %vm449_vm4 = vweird.f32 %v924_v41  ;;  %vm435_vm6 = vmor %vm433_vm5, %vm434_vm3 }
 0x2c1   :  { %v430_v47 = vsub.f32 1.0, %v429_v42  ;;  %v411_v49 = vsel %vm408_vm14, %v410_v43, %v406_v9  ;;  %v421_v50 = vsel %vm420_vm15, %v920_v20, %v417_v3  ;;  %vm450_vm10 = vmor %vm448_vm7, %vm449_vm4 }
 0x2c2   :  { %v445_v51 = vsub.f32 1.0, %v444_v45  ;;  %867 = vmatpush.msk.msra.mxu0 %vm70_vm0, %v411_v49  ;;  %v426_v52 = vsel %vm423_vm2, %v425_v46, %v421_v50 }
 0x2c3   :  { %v462_v55 = vrot.slane %v426_v52, 4  ;;  %870 = vmatpush.msk.msra.mxu1 %vm70_vm0, %v426_v52  ;;  %868 = vmatmul.msk.f32.vlgmr.msra.gmra.mxu0 %vm63_vm1, %v470_v57  ;;  %v431_v56 = vmul.f32 %v922_v38, %v430_v47 }
 0x2c4   :  { %871 = vmatmul.msk.f32.vlgmr.msra.gmra.mxu1 %vm63_vm1, %v470_v57  ;;  %v446_v59 = vmul.f32 %v924_v41, %v445_v51 }
 0x2c5   :  { %v432_v24 = vadd.f32 %v922_v38, %v431_v56  ;;  %v464_v35 = vsel %vm70_vm0, %v411_v49, %v462_v55 }
 0x2c6   :  { %v447_v60 = vadd.f32 %v924_v41, %v446_v59  ;;  %468 = vst [vmem:[#allocation5] sm:$0xff] %v464_v35 }
 0x2c7   :  { %v436_v25 = vsel %vm435_vm6, %v922_v38, %v432_v24 }
 0x2c8   :  { %v441_v40 = vsel %vm438_vm9, %v440_v36, %v436_v25  ;;  %v451_v48 = vsel %vm450_vm10, %v924_v41, %v447_v60 }
 0x2c9   :  { %873 = vmatpush.msk.msra.mxu2 %vm70_vm0, %v441_v40  ;;  %v456_v61 = vsel %vm453_vm11, %v455_v26, %v451_v48 }
 0x2ca   :  { %v463_v62 = vrot.slane %v456_v61, 4  ;;  %876 = vmatpush.msk.msra.mxu3 %vm70_vm0, %v456_v61  ;;  %874 = vmatmul.msk.f32.vlgmr.msra.gmra.mxu2 %vm63_vm1, %v470_v57 }
 0x2cb   :  { %877 = vmatmul.msk.f32.vlgmr.msra.gmra.mxu3 %vm63_vm1, %v470_v57  ;;  %869 = vmatmul.msk.f32.gmra.mxu0 %vm63_vm1, %v471_v63 }
 0x2cc   :  { %872 = vmatmul.msk.f32.gmra.mxu1 %vm63_vm1, %v471_v63  ;;  %v465_v1 = vsel %vm70_vm0, %v441_v40, %v463_v62 }
 0x2cd   :  { %469 = vst [vmem:[#allocation5 + $0x8] sm:$0xff] %v465_v1 }
 0x2ce   :  { %822 = dma.vmem_to_hbm [thread:$0]  %s818_s27, 256, %s820_s25, [#allocation4]  }
 0x2d2   :  { %875 = vmatmul.msk.f32.gmra.mxu2 %vm63_vm1, %v471_v63 }
 0x2d3   :  { %878 = vmatmul.msk.f32.gmra.mxu3 %vm63_vm1, %v471_v63 }
 0x340   :  { %v515_v2 = vpop.f32.mrf.mxu0 }
 0x341   :  { %v538_v4 = vpop.f32.mrf.mxu1  ;;  %v516_v6 = vadd.f32 %v515_v2, %v477_v5 }
 0x342   :  { %v539_v7 = vadd.f32 %v538_v4, %v477_v5 }
 0x343   :  { %v1203_v12 = vmax.f32 %v516_v6, 0.0 }
 0x344   :  { %v1205_v13 = vmax.f32 %v539_v7, 0.0 }
 0x345   :  { %v608_v29 = vmul.f32 %v1203_v12, %v1203_v12 }
 0x346   :  { %v598_v28 = vadd.f32 %v1205_v13, %v1203_v12  ;;  %v609_v30 = vmul.f32 %v1205_v13, %v1205_v13 }
 0x348   :  { %v518_v10 = vpop.f32.mrf.mxu0  ;;  %v616_v45 = vadd.f32 %v609_v30, %v608_v29 }
 0x349   :  { %v541_v11 = vpop.f32.mrf.mxu1  ;;  %v519_v15 = vadd.f32 %v518_v10, %v482_v8 }
 0x34a   :  { %v542_v16 = vadd.f32 %v541_v11, %v482_v8 }
 0x34b   :  { %v1209_v22 = vmax.f32 %v519_v15, 0.0 }
 0x34c   :  { %v1211_v27 = vmax.f32 %v542_v16, 0.0 }
 0x34d   :  { %v561_v17 = vpop.f32.mrf.mxu2  ;;  %v612_v33 = vmul.f32 %v1209_v22, %v1209_v22 }
 0x34e   :  { %v562_v18 = vadd.f32 %v561_v17, %v477_v5  ;;  %v584_v19 = vpop.f32.mrf.mxu3  ;;  %v613_v34 = vmul.f32 %v1211_v27, %v1211_v27  ;;  %v603_v3 = vadd.f32 %v1211_v27, %v1209_v22 }
 0x34f   :  { %v585_v20 = vadd.f32 %v584_v19, %v477_v5 }
 0x350   :  { %v1207_v21 = vmax.f32 %v562_v18, 0.0  ;;  %v621_v47 = vadd.f32 %v613_v34, %v612_v33 }
 0x351   :  { %v1219_v31 = vmax.f32 %v585_v20, 0.0 }
 0x352   :  { %v599_v32 = vadd.f32 %v598_v28, %v1207_v21  ;;  %v610_v39 = vmul.f32 %v1207_v21, %v1207_v21 }
 0x353   :  { %v611_v51 = vmul.f32 %v1219_v31, %v1219_v31 }
 0x354   :  { %v600_v38 = vadd.f32 %v599_v32, %v1219_v31  ;;  %v617_v57 = vadd.f32 %v616_v45, %v610_v39 }
 0x355   :  { %v564_v41 = vpop.f32.mrf.mxu2 }
 0x356   :  { %v565_v42 = vadd.f32 %v564_v41, %v482_v8  ;;  %v587_v43 = vpop.f32.mrf.mxu3  ;;  %601 = vadd.xlane.f32.xlu2 %v600_v38  ;;  %v618_v54 = vadd.f32 %v617_v57, %v611_v51 }
 0x357   :  { %v588_v9 = vadd.f32 %v587_v43, %v482_v8  ;;  %v880_v43 = vld [vmem:[%s1282_s4 + $0x10] sm:$0xff] }
 0x358   :  { %v1231_v46 = vmax.f32 %v565_v42, 0.0 }
 0x359   :  { %v1233_v49 = vmax.f32 %v588_v9, 0.0 }
 0x35a   :  { %v604_v50 = vadd.f32 %v603_v3, %v1231_v46  ;;  %v614_v52 = vmul.f32 %v1231_v46, %v1231_v46 }
 0x35b   :  { %v615_v55 = vmul.f32 %v1233_v49, %v1233_v49 }
 0x35c   :  { %v605_v53 = vadd.f32 %v604_v50, %v1233_v49  ;;  %v622_v56 = vadd.f32 %v621_v47, %v614_v52 }
 0x35e   :  { %606 = vadd.xlane.f32.xlu0 %v605_v53  ;;  %619 = vadd.xlane.f32.xlu2 %v618_v54  ;;  %v623_v58 = vadd.f32 %v622_v56, %v615_v55 }
 0x360   :  { %624 = vadd.xlane.f32.xlu1 %v623_v58 }
 0x3c9   :  { %v602_v59 = vpop.xlane.xlu2 %601 }
 0x3ca   :  { %v626_v23 = vmul.f32 0.001953125, %v602_v59 }
 0x3cc   :  { %v630_v36 = vmul.f32 %v626_v23, %v626_v23 }
 0x3d1   :  { %v607_v24 = vpop.xlane.xlu0 %606  ;;  %v620_v35 = vpop.xlane.xlu2 %619 }
 0x3d2   :  { %v627_v60 = vmul.f32 0.001953125, %v607_v24  ;;  %v628_v25 = vmul.f32 0.001953125, %v620_v35 }
 0x3d3   :  { %v625_v26 = vpop.xlane.xlu1 %624 }
 0x3d4   :  { %v631_v40 = vmul.f32 %v627_v60, %v627_v60  ;;  %v632_v48 = vsub.f32 %v628_v25, %v630_v36  ;;  %v629_v61 = vmul.f32 0.001953125, %v625_v26 }
 0x3d6   :  { %v634_v62 = vmax.f32 %v632_v48, 0.0  ;;  %v633_v63 = vsub.f32 %v629_v61, %v631_v40 }
 0x3d8   :  { %v636_v1 = vadd.f32 1e-05, %v634_v62  ;;  %v635_v2 = vmax.f32 %v633_v63, 0.0 }
 0x3da   :  { %925 = vrsqrt.f32 %v636_v1  ;;  %v637_v4 = vadd.f32 1e-05, %v635_v2  ;;  %vm644_vm12 = vweird.f32 %v636_v1 }
 0x3dc   :  { %927 = vrsqrt.f32 %v637_v4  ;;  %vm654_vm15 = vweird.f32 %v637_v4 }
 0x3e0   :  { %v926_v5 = vpop.eup %925 }
 0x3e1   :  { %v639_v6 = vmul.f32 %v926_v5, %v636_v1  ;;  %vm645_vm1 = vweird.f32 %v926_v5 }
 0x3e2   :  { %v928_v7 = vpop.eup %927  ;;  %vm646_vm14 = vmor %vm644_vm12, %vm645_vm1 }
 0x3e3   :  { %v640_v8 = vmul.f32 %v926_v5, %v639_v6  ;;  %v649_v10 = vmul.f32 %v928_v7, %v637_v4  ;;  %vm655_vm13 = vweird.f32 %v928_v7 }
 0x3e4   :  { %vm656_vm2 = vmor %vm654_vm15, %vm655_vm13 }
 0x3e5   :  { %v641_v11 = vmul.f32 0.5, %v640_v8  ;;  %v650_v15 = vmul.f32 %v928_v7, %v649_v10 }
 0x3e7   :  { %v642_v16 = vsub.f32 1.5, %v641_v11  ;;  %v651_v17 = vmul.f32 0.5, %v650_v15 }
 0x3e9   :  { %v652_v18 = vsub.f32 1.5, %v651_v17  ;;  %v643_v19 = vmul.f32 %v926_v5, %v642_v16 }
 0x3eb   :  { %v647_v20 = vsel %vm646_vm14, %v926_v5, %v643_v19  ;;  %v653_v28 = vmul.f32 %v928_v7, %v652_v18 }
 0x3ec   :  { %v658_v29 = vmul.f32 %v647_v20, %v1142_v44 }
 0x3ed   :  { %v657_v30 = vsel %vm656_vm2, %v928_v7, %v653_v28 }
 0x3ee   :  { %v660_v32 = vmul.f32 %v658_v29, %v626_v23  ;;  %v659_v33 = vmul.f32 %v657_v30, %v1164_v14 }
 0x3f0   :  { %664 = vrot.lane.b32.xlu1 %v660_v32, %s1010_s9  ;;  %679 = vperm.xlu2 %899, %v659_v33   ;;  %v661_v34 = vmul.f32 %v659_v33, %v627_v60 }
 0x3f2   :  { %666 = vrot.lane.b32.xlu0 %v661_v34, %s1010_s9 }
 0x3f8   :  { %902 = vset.pattern.permute.xlu2 %v1011_v37 }
 0x3fa   :  { %674 = vperm.xlu0 %900, %v658_v29  }
 0x402   :  { %904 = vset.pattern.permute.xlu0 %v1008_v0 }
 0x44a   :  { %v680_v3 = vpop.permute.xlu2 %679 }
 0x44b   :  { %v686_v45 = vmul.f32 %v680_v3, %v1209_v22  ;;  %v687_v9 = vmul.f32 %v680_v3, %v1211_v27  ;;  %v689_v57 = vmul.f32 %v680_v3, %v1233_v49 }
 0x462   :  { %v665_v38 = vpop.permute.xlu1 %664 }
 0x463   :  { %v670_v39 = vsub.f32 %v1142_v44, %v665_v38  ;;  %v688_v44 = vmul.f32 %v680_v3, %v1231_v46 }
 0x464   :  { %v667_v41 = vpop.permute.xlu0 %666 }
 0x465   :  { %v671_v42 = vsub.f32 %v1164_v14, %v667_v41  ;;  %692 = vperm.xlu2 %902, %v670_v39  }
 0x467   :  { %697 = vperm.xlu1 %901, %v671_v42  }
 0x46c   :  { %v675_v37 = vpop.permute.xlu0 %674 }
 0x46d   :  { %v682_v14 = vmul.f32 %v675_v37, %v1203_v12  ;;  %v683_v47 = vmul.f32 %v675_v37, %v1205_v13  ;;  %v684_v55 = vmul.f32 %v675_v37, %v1207_v21  ;;  %v685_v22 = vmul.f32 %v675_v37, %v1219_v31  ;;  %v879_v12 = vld [vmem:[%s1281_s3 + $0x10] sm:$0xff]  ;;  %s1013_s3 = smov [#allocation6]  }
 0x46e   :  { %s828_s0 = sshll.u32 %s1013_s3, 4  ;;  %s829_s0 = int_to_ptr.vmem [resolvable:$true] %s828_s0 }
 0x46f   :  { %903 = vset.pattern.permute.xlu1 %v1008_v0 }
 0x470   :  { %714 = vperm.xlu1 %903, %v880_v43  }
 0x4bf   :  { %v693_v0 = vpop.permute.xlu2 %692 }
 0x4c0   :  { %v700_v56 = vadd.f32 %v693_v0, %v682_v14  ;;  %v701_v27 = vadd.f32 %v693_v0, %v683_v47  ;;  %v702_v46 = vadd.f32 %v693_v0, %v684_v55  ;;  %v703_v49 = vadd.f32 %v693_v0, %v685_v22 }
 0x4d9   :  { %v698_v50 = vpop.permute.xlu1 %697 }
 0x4da   :  { %v704_v51 = vadd.f32 %v698_v50, %v686_v45  ;;  %v705_v52 = vadd.f32 %v698_v50, %v687_v9  ;;  %v706_v53 = vadd.f32 %v698_v50, %v688_v44  ;;  %v707_v54 = vadd.f32 %v698_v50, %v689_v57 }
 0x4dc   :  { %734 = vmatpush.msrb.mxu0 %v704_v51  ;;  %754 = vmatpush.msrb.mxu1 %v705_v52 }
 0x4dd   :  { %774 = vmatpush.msrb.mxu2 %v706_v53  ;;  %794 = vmatpush.msrb.mxu3 %v707_v54 }
 0x4de   :  { %735 = vmatpush.msrb.mxu0 %v700_v56  ;;  %755 = vmatpush.msrb.mxu1 %v701_v27 }
 0x4df   :  { %775 = vmatpush.msrb.mxu2 %v702_v46  ;;  %795 = vmatpush.msrb.mxu3 %v703_v49 }
 0x4e0   :  { %884 = vmatmul.msk.f32.vlgmr.msrb.gmra.mxu3 %vm298_vm8, %v879_v12  ;;  %883 = vmatmul.msk.f32.vlgmr.msrb.gmra.mxu2 %vm298_vm8, %v879_v12 }
 0x4e1   :  { %882 = vmatmul.msk.f32.vlgmr.msrb.gmra.mxu1 %vm298_vm8, %v879_v12  ;;  %881 = vmatmul.msk.f32.vlgmr.msrb.gmra.mxu0 %vm298_vm8, %v879_v12 }
 0x4e2   :  { %v715_v13 = vpop.permute.xlu1 %714 }
 0x55e   :  { %v757_v21 = vpop.f32.mrf.mxu1  ;;  %v737_v31 = vpop.f32.mrf.mxu0 }
 0x55f   :  { %v758_v58 = vadd.f32 %v757_v21, %v715_v13  ;;  %v738_v59 = vadd.f32 %v737_v31, %v715_v13 }
 0x561   :  { %v804_v23 = vrot.slane %v758_v58, 4 }
 0x563   :  { %v797_v24 = vpop.f32.mrf.mxu3  ;;  %v806_v35 = vsel %vm70_vm0, %v738_v59, %v804_v23  ;;  %v777_v36 = vpop.f32.mrf.mxu2 }
 0x564   :  { %v798_v60 = vadd.f32 %v797_v24, %v715_v13  ;;  %810 = vst [vmem:[#allocation6] sm:$0xff] %v806_v35  ;;  %v778_v26 = vadd.f32 %v777_v36, %v715_v13 }
 0x566   :  { %v805_v25 = vrot.slane %v798_v60, 4 }
 0x568   :  { %v807_v40 = vsel %vm70_vm0, %v778_v26, %v805_v25 }
 0x569   :  { %811 = vst [vmem:[#allocation6 + $0x8] sm:$0xff] %v807_v40 }
 0x56a   :  { %833 = dma.vmem_to_hbm [thread:$0]  %s829_s0, 256, %s831_s29, [#allocation7]  }
 0x56b   :  { %1003 = dma.done.wait [#allocation4], 256  }
 0x56c   :  { %1004 = vsyncadd [#allocation4], 4294967040 }
 0x56d   :  { %1005 = dma.done.wait [#allocation7], 256  }
 0x56e   :  { %1006 = vsyncadd [#allocation7], 4294967040 }
 0x56f   :  { %842 = vsyncpa [#allocation3], 1 }
 0x570   :  { %843 = vsyncpa [#allocation4], 1 }
 0x571   :  { %844 = vsyncpa [#allocation7], 1 }

</bundles_post_ra>
